<compile_context>
chip_gen: v6e
topology: v6e:2x2x1
jax: 0.10.0
libtpu: 0.0.40
codegen_flags: <defaults>
</compile_context>

<pallas_src>
import functools

import jax
import jax.numpy as jnp
from jax.experimental import pallas as pl
from jax.experimental.pallas import tpu as pltpu

NEG_SLOPE = 0.2      # PyG GATConv default negative_slope
LANE = 128           # TPU lane width
NEG_INF = -1e30      # f32-safe mask constant (logits/softmax stay in f32)


def _round_up(x, m):
    return (x + m - 1) // m * m


def _gat_layer_kernel(x_src_ref, x_dst_ref, adj_ref, w_ref, asrc_ref, b_ref,
                      out_ref, *, fout_real, activation):
    """One single-head GATConv layer for one tile of destination nodes.

    x_src_ref : [N_pad, Fin_pad]    f32   all nodes (message sources)
    x_dst_ref : [TM,   Fin_pad]     f32   destination-node row tile
    adj_ref   : [TM,   N_pad]       f32   adj[i, j] = 1 iff edge j -> i (self-loops added)
    w_ref     : [Fin_pad, Fout_pad] bf16  fused weight: [:, :fout_real] = W,
                                          [:, fout_real] = W @ a_dst^T, rest zero
    asrc_ref  : [1, Fin_pad]        bf16  (W @ a_src^T)^T (source attention vec, input space)
    b_ref     : [1, Fout_pad]       f32   zero-padded bias
    out_ref   : [TM, Fout_pad]      f32   lane-dense output tile
    """
    xs = x_src_ref[...].astype(jnp.bfloat16)
    xd = x_dst_ref[...].astype(jnp.bfloat16)
    w = w_ref[...]

    # Fused transform (bf16 inputs, f32 accumulation on the MXU).
    h_src = jnp.dot(xs, w, preferred_element_type=jnp.float32)      # [N_pad, Fout_pad]
    h_dst = jnp.dot(xd, w, preferred_element_type=jnp.float32)      # [TM, Fout_pad]
    alpha_dst = h_dst[:, fout_real:fout_real + 1]                   # [TM, 1] (fused column)

    # alpha_src as a lane-major row via one tiny MXU pass.
    alpha_src = jax.lax.dot_general(
        asrc_ref[...], xs, (((1,), (1,)), ((), ())),
        preferred_element_type=jnp.float32)                         # [1, N_pad]

    # Attention logits + LeakyReLU (max form) + neighbor mask, all f32.
    e = alpha_dst + alpha_src                                       # [TM, N_pad]
    e = jnp.maximum(e, NEG_SLOPE * e)
    e = jnp.where(adj_ref[...] > 0.0, e, NEG_INF)

    # Softmax over neighbors; overwrite e in place, divide on the EUP slot.
    e = jnp.exp(e - jnp.max(e, axis=1, keepdims=True))
    attn = e * pl.reciprocal(jnp.sum(e, axis=1, keepdims=True), approx=True)

    # Attention-weighted aggregation (bf16 in, f32 accumulate), then bias.
    agg = jnp.dot(attn.astype(jnp.bfloat16), h_src.astype(jnp.bfloat16),
                  preferred_element_type=jnp.float32) + b_ref[...]  # [TM, Fout_pad]

    if activation == "relu":
        out = jnp.maximum(agg, 0.0)
    else:  # log_softmax over the *real* feature columns only (padding masked out)
        cols = jax.lax.broadcasted_iota(jnp.int32, agg.shape, 1)
        masked = jnp.where(cols < fout_real, agg, NEG_INF)
        m = jnp.max(masked, axis=1, keepdims=True)
        p = jnp.exp(masked - m)
        out = (masked - m) - jnp.log(jnp.sum(p, axis=1, keepdims=True))

    out_ref[...] = out.astype(out_ref.dtype)


def _gat_layer(x_pad, adj_pad, w_fused, a_src_in, b_pad, *, fout_real, tm, activation):
    n_pad, fin_pad = x_pad.shape
    fout_pad = w_fused.shape[1]
    assert n_pad % tm == 0 and tm % 8 == 0
    n_tiles = n_pad // tm

    flops = 2 * n_tiles * (n_pad * fin_pad * fout_pad + tm * fin_pad * fout_pad
                           + n_pad * fin_pad + tm * n_pad * fout_pad)
    transcendentals = n_tiles * (tm * n_pad + tm * fout_pad + 2 * tm)
    bytes_accessed = 4 * (n_tiles * n_pad * fin_pad + n_pad * n_pad + n_pad * fout_pad) \
        + 2 * (fin_pad * fout_pad + fin_pad)

    kernel = functools.partial(_gat_layer_kernel, fout_real=fout_real, activation=activation)
    return pl.pallas_call(
        kernel,
        out_shape=jax.ShapeDtypeStruct((n_pad, fout_pad), jnp.float32),
        grid=(n_tiles,),
        in_specs=[
            pl.BlockSpec((n_pad, fin_pad), lambda i: (0, 0)),   # x, all source nodes
            pl.BlockSpec((tm, fin_pad), lambda i: (i, 0)),      # x, destination row tile
            pl.BlockSpec((tm, n_pad), lambda i: (i, 0)),        # adj row tile (streamed)
            pl.BlockSpec((fin_pad, fout_pad), lambda i: (0, 0)),
            pl.BlockSpec((1, fin_pad), lambda i: (0, 0)),
            pl.BlockSpec((1, fout_pad), lambda i: (0, 0)),
        ],
        out_specs=pl.BlockSpec((tm, fout_pad), lambda i: (i, 0)),
        compiler_params=pltpu.CompilerParams(dimension_semantics=("parallel",)),
        cost_estimate=pl.CostEstimate(flops=flops, transcendentals=transcendentals,
                                      bytes_accessed=bytes_accessed),
    )(x_pad, x_pad, adj_pad, w_fused, a_src_in, b_pad)


def _prepare_layer(w, a_src, a_dst, b, fin_pad, fout_pad):
    """Fold a_dst into W, project a_src into input space, pad everything to lane width."""
    fin, fout = w.shape
    w_fused = jnp.zeros((fin_pad, fout_pad), jnp.float32)
    w_fused = w_fused.at[:fin, :fout].set(w)
    w_fused = w_fused.at[:fin, fout].set(jnp.squeeze(w @ a_dst.reshape(fout, 1), -1))
    a_src_in = jnp.zeros((1, fin_pad), jnp.float32)
    a_src_in = a_src_in.at[0, :fin].set(jnp.squeeze(w @ a_src.reshape(fout, 1), -1))
    b_pad = jnp.zeros((1, fout_pad), jnp.float32).at[0, :fout].set(b.reshape(fout))
    return w_fused.astype(jnp.bfloat16), a_src_in.astype(jnp.bfloat16), b_pad


def gatv1_forward(x, adj, params, *, tm=8):
    n, in_dim = x.shape
    hidden = params["w1"].shape[1]
    out_dim = params["w2"].shape[1]

    n_pad = _round_up(max(n, tm), tm)
    fin1 = _round_up(in_dim, LANE)
    f1 = _round_up(hidden + 1, LANE)     # layer-1 padded width (holds fused alpha_dst col)
    f2 = _round_up(out_dim + 1, LANE)

    x_pad = jnp.zeros((n_pad, fin1), jnp.float32).at[:n, :in_dim].set(x)
    adj_pad = jnp.zeros((n_pad, n_pad), jnp.float32).at[:n, :n].set(adj)

    w1f, as1, b1 = _prepare_layer(params["w1"], params["a_src1"], params["a_dst1"],
                                  params["b1"], fin1, f1)
    w2f, as2, b2 = _prepare_layer(params["w2"], params["a_src2"], params["a_dst2"],
                                  params["b2"], f1, f2)

    # Layer 1 + ReLU (padded/fused columns are harmless: layer-2 fused weights have
    # zero rows there), then layer 2 + log_softmax over the real output features.
    h1 = _gat_layer(x_pad, adj_pad, w1f, as1, b1, fout_real=hidden, tm=tm, activation="relu")
    h2 = _gat_layer(h1, adj_pad, w2f, as2, b2, fout_real=out_dim, tm=tm,
                    activation="log_softmax")
    return h2[:n, :out_dim]


def build_adj(edge_index, num_nodes):
    # Dense adjacency: adj[dst, src] = 1, plus self-loops (PyG add_self_loops=True).
    src, dst = edge_index[0], edge_index[1]
    adj = jnp.zeros((num_nodes, num_nodes), jnp.float32)
    adj = adj.at[dst, src].set(1.0)
    adj = jnp.minimum(adj + jnp.eye(num_nodes, dtype=jnp.float32), 1.0)
    return adj


def glorot(key, shape):
    fan = shape[0] + shape[1]
    lim = jnp.sqrt(6.0 / fan)
    return jax.random.uniform(key, shape, jnp.float32, -lim, lim)


def _reference_forward(x, adj, params):
    """Pure-JAX f32 reference with identical PyG GAT semantics."""
    def layer(x, w, a_s, a_d, b):
        h = x @ w
        e = (h @ a_d.T) + (h @ a_s.T).T          # e[i, j] = h_i.a_dst + h_j.a_src
        e = jnp.where(e > 0, e, NEG_SLOPE * e)
        e = jnp.where(adj > 0, e, -jnp.inf)
        attn = jax.nn.softmax(e, axis=1)
        return attn @ h + b
    h1 = jax.nn.relu(layer(x, params["w1"], params["a_src1"], params["a_dst1"], params["b1"]))
    h2 = layer(h1, params["w2"], params["a_src2"], params["a_dst2"], params["b2"])
    return jax.nn.log_softmax(h2, axis=1)


if __name__ == "__main__":
    key = jax.random.PRNGKey(0)
    N, in_dim, hidden_dim, out_dim = 16, 8, 16, 8
    ks = jax.random.split(key, 10)

    x = jax.random.normal(ks[0], (N, in_dim), jnp.float32)

    # Deterministic graph: ring edges + N random chords.
    ring_src = jnp.arange(N, dtype=jnp.int32)
    ring_dst = (ring_src + 1) % N
    extra_src = jax.random.randint(ks[1], (N,), 0, N, dtype=jnp.int32)
    extra_dst = jax.random.randint(ks[2], (N,), 0, N, dtype=jnp.int32)
    edge_index = jnp.stack([jnp.concatenate([ring_src, extra_src]),
                            jnp.concatenate([ring_dst, extra_dst])], axis=0)
    adj = build_adj(edge_index, N)

    params = dict(
        w1=glorot(ks[3], (in_dim, hidden_dim)),
        a_src1=glorot(ks[4], (1, hidden_dim)),
        a_dst1=glorot(ks[5], (1, hidden_dim)),
        b1=jnp.zeros((1, hidden_dim), jnp.float32),
        w2=glorot(ks[6], (hidden_dim, out_dim)),
        a_src2=glorot(ks[7], (1, out_dim)),
        a_dst2=glorot(ks[8], (1, out_dim)),
        b2=jnp.zeros((1, out_dim), jnp.float32),
    )

    out = gatv1_forward(x, adj, params, tm=8)
    jax.block_until_ready(out)
    assert out.shape == (N, out_dim)

    # Loose tolerance: kernel uses bf16 MXU inputs with f32 accumulation.
    ref = _reference_forward(x, adj, params)
    max_err = float(jnp.max(jnp.abs(out - ref)))
    assert max_err < 0.1, f"max abs error {max_err}"

    print("KERNEL_OK")
</pallas_src>

<mosaic_0001>
module attributes {stable_mosaic.version = 11 : i64} {
  func.func @_gat_layer_kernel(%arg0: i32, %arg1: memref<16x128xf32, #tpu.memory_space<vmem>>, %arg2: memref<8x128xf32, #tpu.memory_space<vmem>>, %arg3: memref<8x16xf32, #tpu.memory_space<vmem>>, %arg4: memref<128x128xbf16, #tpu.memory_space<vmem>>, %arg5: memref<1x128xbf16, #tpu.memory_space<vmem>>, %arg6: memref<1x128xf32, #tpu.memory_space<vmem>>, %arg7: memref<8x128xf32, #tpu.memory_space<vmem>>) attributes {dimension_semantics = [#tpu.dimension_semantics<parallel>], iteration_bounds = array<i64: 2>, scalar_prefetch = 0 : i64, scratch_operands = 0 : i64, tpu.core_type = #tpu.core_type<tc>, window_params = [{pipeline_mode = #tpu.pipeline_mode<synchronous>, transform_indices = @transform_0, window_bounds = array<i64: 16, 128>}, {transform_indices = @transform_1, window_bounds = array<i64: 8, 128>}, {transform_indices = @transform_2, window_bounds = array<i64: 8, 16>}, {pipeline_mode = #tpu.pipeline_mode<synchronous>, transform_indices = @transform_3, window_bounds = array<i64: 128, 128>}, {pipeline_mode = #tpu.pipeline_mode<synchronous>, transform_indices = @transform_4, window_bounds = array<i64: 1, 128>}, {pipeline_mode = #tpu.pipeline_mode<synchronous>, transform_indices = @transform_5, window_bounds = array<i64: 1, 128>}, {transform_indices = @transform_6, window_bounds = array<i64: 8, 128>}]} {
    %c0 = arith.constant 0 : index
    %c0_0 = arith.constant 0 : index
    %0 = vector.load %arg1[%c0, %c0_0] : memref<16x128xf32, #tpu.memory_space<vmem>>, vector<16x128xf32>
    %1 = arith.truncf %0 : vector<16x128xf32> to vector<16x128xbf16>
    %c0_1 = arith.constant 0 : index
    %c0_2 = arith.constant 0 : index
    %2 = vector.load %arg2[%c0_1, %c0_2] : memref<8x128xf32, #tpu.memory_space<vmem>>, vector<8x128xf32>
    %3 = arith.truncf %2 : vector<8x128xf32> to vector<8x128xbf16>
    %c0_3 = arith.constant 0 : index
    %c0_4 = arith.constant 0 : index
    %4 = vector.load %arg4[%c0_3, %c0_4] : memref<128x128xbf16, #tpu.memory_space<vmem>>, vector<128x128xbf16>
    %cst = arith.constant dense<0.000000e+00> : vector<16x128xf32>
    %5 = tpu.matmul %1, %4, %cst {dimension_numbers = #tpu.dot_dimension_numbers<[1], [0], [0], [1], [0, 0, 1, 1], [], []>} : vector<16x128xbf16>, vector<128x128xbf16>, vector<16x128xf32> -> vector<16x128xf32>
    %cst_5 = arith.constant dense<0.000000e+00> : vector<8x128xf32>
    %6 = tpu.matmul %3, %4, %cst_5 {dimension_numbers = #tpu.dot_dimension_numbers<[1], [0], [0], [1], [0, 0, 1, 1], [], []>} : vector<8x128xbf16>, vector<128x128xbf16>, vector<8x128xf32> -> vector<8x128xf32>
    %7 = vector.extract_strided_slice %6 {offsets = [0, 16], sizes = [8, 1], strides = [1, 1]} : vector<8x128xf32> to vector<8x1xf32>
    %c0_6 = arith.constant 0 : index
    %c0_7 = arith.constant 0 : index
    %8 = vector.load %arg5[%c0_6, %c0_7] : memref<1x128xbf16, #tpu.memory_space<vmem>>, vector<1x128xbf16>
    %cst_8 = arith.constant dense<0.000000e+00> : vector<1x16xf32>
    %9 = tpu.matmul %8, %1, %cst_8 {dimension_numbers = #tpu.dot_dimension_numbers<[1], [1], [0], [0], [0, 0, 1, 0], [], []>} : vector<1x128xbf16>, vector<16x128xbf16>, vector<1x16xf32> -> vector<1x16xf32>
    %10 = vector.broadcast %7 : vector<8x1xf32> to vector<8x16xf32>
    %11 = vector.broadcast %9 : vector<1x16xf32> to vector<8x16xf32>
    %12 = arith.addf %10, %11 : vector<8x16xf32>
    %cst_9 = arith.constant 2.000000e-01 : f32
    %13 = vector.broadcast %cst_9 : f32 to vector<8x16xf32>
    %14 = arith.mulf %13, %12 : vector<8x16xf32>
    %15 = arith.maximumf %12, %14 : vector<8x16xf32>
    %c0_10 = arith.constant 0 : index
    %c0_11 = arith.constant 0 : index
    %16 = vector.load %arg3[%c0_10, %c0_11] : memref<8x16xf32, #tpu.memory_space<vmem>>, vector<8x16xf32>
    %cst_12 = arith.constant 0.000000e+00 : f32
    %17 = vector.broadcast %cst_12 : f32 to vector<8x16xf32>
    %18 = arith.cmpf ogt, %16, %17 : vector<8x16xf32>
    %cst_13 = arith.constant -1.000000e+30 : f32
    %19 = vector.broadcast %cst_13 : f32 to vector<8x16xf32>
    %20 = arith.select %18, %15, %19 : vector<8x16xi1>, vector<8x16xf32>
    %cst_14 = arith.constant dense<0xFF800000> : vector<8xf32>
    %21 = vector.multi_reduction <maximumf>, %20, %cst_14 [1] : vector<8x16xf32> to vector<8xf32>
    %22 = vector.shape_cast %21 : vector<8xf32> to vector<8x1xf32>
    %23 = vector.broadcast %22 : vector<8x1xf32> to vector<8x16xf32>
    %24 = arith.subf %20, %23 : vector<8x16xf32>
    %25 = math.exp %24 : vector<8x16xf32>
    %cst_15 = arith.constant dense<0.000000e+00> : vector<8xf32>
    %26 = vector.multi_reduction <add>, %25, %cst_15 [1] : vector<8x16xf32> to vector<8xf32>
    %27 = vector.shape_cast %26 : vector<8xf32> to vector<8x1xf32>
    %28 = tpu.reciprocal %27 {approx = true} : vector<8x1xf32> -> vector<8x1xf32>
    %29 = vector.broadcast %28 : vector<8x1xf32> to vector<8x16xf32>
    %30 = arith.mulf %25, %29 : vector<8x16xf32>
    %31 = arith.truncf %30 : vector<8x16xf32> to vector<8x16xbf16>
    %32 = arith.truncf %5 : vector<16x128xf32> to vector<16x128xbf16>
    %cst_16 = arith.constant dense<0.000000e+00> : vector<8x128xf32>
    %33 = tpu.matmul %31, %32, %cst_16 {dimension_numbers = #tpu.dot_dimension_numbers<[1], [0], [0], [1], [0, 0, 1, 1], [], []>} : vector<8x16xbf16>, vector<16x128xbf16>, vector<8x128xf32> -> vector<8x128xf32>
    %c0_17 = arith.constant 0 : index
    %c0_18 = arith.constant 0 : index
    %34 = vector.load %arg6[%c0_17, %c0_18] : memref<1x128xf32, #tpu.memory_space<vmem>>, vector<1x128xf32>
    %35 = vector.broadcast %34 : vector<1x128xf32> to vector<8x128xf32>
    %36 = arith.addf %33, %35 : vector<8x128xf32>
    %cst_19 = arith.constant 0.000000e+00 : f32
    %37 = vector.broadcast %cst_19 : f32 to vector<8x128xf32>
    %38 = arith.maximumf %36, %37 : vector<8x128xf32>
    %c0_20 = arith.constant 0 : index
    %c0_21 = arith.constant 0 : index
    %39 = vector.load %arg7[%c0_20, %c0_21] : memref<8x128xf32, #tpu.memory_space<vmem>>, vector<8x128xf32>
    tpu.vector_store %arg7[%c0_20, %c0_21], %38 {strides = array<i32>} : memref<8x128xf32, #tpu.memory_space<vmem>>, vector<8x128xf32>,
    return
  }
  func.func @transform_0(%arg0: i32) -> (i32, i32) {
    %c0_i32 = arith.constant 0 : i32
    %c0_i32_0 = arith.constant 0 : i32
    %c0_i32_1 = arith.constant 0 : i32
    return %c0_i32, %c0_i32_0 : i32, i32
  }
  func.func @transform_1(%arg0: i32) -> (i32, i32) {
    %c0_i32 = arith.constant 0 : i32
    %c0_i32_0 = arith.constant 0 : i32
    return %arg0, %c0_i32 : i32, i32
  }
  func.func @transform_2(%arg0: i32) -> (i32, i32) {
    %c0_i32 = arith.constant 0 : i32
    %c0_i32_0 = arith.constant 0 : i32
    return %arg0, %c0_i32 : i32, i32
  }
  func.func @transform_3(%arg0: i32) -> (i32, i32) {
    %c0_i32 = arith.constant 0 : i32
    %c0_i32_0 = arith.constant 0 : i32
    %c0_i32_1 = arith.constant 0 : i32
    return %c0_i32, %c0_i32_0 : i32, i32
  }
  func.func @transform_4(%arg0: i32) -> (i32, i32) {
    %c0_i32 = arith.constant 0 : i32
    %c0_i32_0 = arith.constant 0 : i32
    %c0_i32_1 = arith.constant 0 : i32
    return %c0_i32, %c0_i32_0 : i32, i32
  }
  func.func @transform_5(%arg0: i32) -> (i32, i32) {
    %c0_i32 = arith.constant 0 : i32
    %c0_i32_0 = arith.constant 0 : i32
    %c0_i32_1 = arith.constant 0 : i32
    return %c0_i32, %c0_i32_0 : i32, i32
  }
  func.func @transform_6(%arg0: i32) -> (i32, i32) {
    %c0_i32 = arith.constant 0 : i32
    %c0_i32_0 = arith.constant 0 : i32
    return %arg0, %c0_i32 : i32, i32
  }
}

</mosaic_0001>

<bundles_post_ra>
// kernel: tpu_custom_call.1
= control target key start
LH: loop header
LB: loop body
LE: loop exit
PB: predicated region body
PF: predicated region fallthrough
CT: control target
= control target key end

     0   :  { %s1412_s0 = inlined_call_operand.hbm [shape: f32[16,128], index: 0, kind: input, shape index: {}]   ;;  %s1413_s1 = inlined_call_operand.hbm [shape: f32[16,128], index: 1, kind: input, shape index: {}]   ;;  %s1414_s2 = inlined_call_operand.hbm [shape: f32[16,16], index: 2, kind: input, shape index: {}]   ;;  %s1415_s3 = inlined_call_operand.hbm [shape: bf16[128,128], index: 3, kind: input, shape index: {}]   ;;  %s1416_s4 = inlined_call_operand.vmem [shape: bf16[1,128], index: 4, kind: input, shape index: {}]   ;;  %s1417_s5 = inlined_call_operand.vmem [shape: f32[1,128], index: 5, kind: input, shape index: {}]   ;;  %s1418_s6 = inlined_call_operand.hbm [shape: f32[16,128], index: 6, kind: output, shape index: {}]  }
   0x1   :  { %1424 = sst [smem:[#allocation16_spill]] %s1412_s0 }
   0x2   :  { %1425 = sst [smem:[#allocation17_spill]] %s1413_s1 }
   0x3   :  { %11 = vsyncpa [#allocation3], 0 }
   0x4   :  { %12 = vsyncpa [#allocation6], 0 }
   0x5   :  { %14 = vsyncpa [#allocation6 + $0x1], 0 }
   0x6   :  { %15 = vsyncpa [#allocation9], 0 }
   0x7   :  { %16 = vsyncpa [#allocation4], 0 }
   0x8   :  { %18 = vsyncpa [#allocation4 + $0x1], 0  ;;  %s1154_s21 = smov 0   ;;  %s1156_s22 = smov 0  }
   0x9   :  { %s1158_s23 = smov 0   ;;  %s1160_s24 = smov 0  }
   0xa LB: > { %s1175_s25 = sadd.s32 1, %s1105_s24   ;;  %s52_s26 = sadd.s32 1, %s1101_s23  ;;  %s1105_s24 = sphi %s1160_s24, %s1450_s24   ;;  %s1101_s23 = sphi %s1158_s23, %s1449_s23   ;;  %s1097_s22 = sphi %s1156_s22, %s1448_s22   ;;  %s1093_s21 = sphi %s1154_s21, %s1447_s21  }
   0xb   : > { %s49_s27 = ssub.s32 %s1105_s24, %s1175_s25  ;;  %p1419_p0 = scmp.ne.s32.totalorder %s1101_s23, %s1097_s22 }
   0xc   : > { %p50_p1 = scmp.eq.s32.totalorder %s49_s27, 0  ;;  %p60_p2 = scmp.eq.s32.totalorder %s1105_s24, 0 }
   0xd   : > { %p867_p4 = scmp.lt.s32.totalorder %s1105_s24, 2  ;;  %s236_s29 = sand.u32 1, %s1105_s24  }
   0xe   : > { %s1186_s28 = scalar_select %p50_p1, %s1101_s23, %s52_s26  }
   0xf   : > { %p61_p5 = por %p60_p2, %p1419_p0  ;;  %s238_s30 = sand.u32 1, %s1101_s23  }
  0x10   : > { %1426 = sst [smem:[#allocation15_spill]] %s1186_s28  ;;  %s1193_s7 = sshll.u32 %s238_s30, 3 }
  0x11   : > { %s736_s8 = sshll.u32 %s1105_s24, 7  ;;  %s1427_s1 = sld [smem:[#allocation17_spill]] }
  0x12   : > { %s240_s12 = scalar_lea.vmem [#allocation5], %s1193_s7  ;;  %p1202_p6 = pnand %p867_p4, %p61_p5 }
  0x13   : > { %s247_s13 = sshll.u32 %s240_s12, 4  ;;  %s1209_s17 = scalar_lea.hbm %s1414_s2, %s736_s8  ;;  %s248_s13 = int_to_ptr.vmem [resolvable:$true] %s247_s13 }
  0x14   : > { %s1211_s18 = scalar_lea.sflag [#allocation6], %s236_s29  ;;  %p1421_p8 = pneg %p1202_p6 }
  0x17   : > { %s1199_s11 = scalar_lea.hbm %s1427_s1, %s736_s8  ;;  %s930_s27 = scalar_lea.hbm %s1427_s1, 256 }
  0x18   : > { %s925_s19 = scalar_lea.hbm %s1199_s11, 128  ;;  %p931_p11 = scmp.lt.s32.totalorder %s1199_s11, %s1427_s1 }
  0x19   : > { %p926_p7 = scmp.ne.s32.totalorder %s1199_s11, %s925_s19  ;;  %p932_p12 = scmp.lt.s32.totalorder %s930_s27, %s925_s19 }
  0x1b   : > { %p928_p9 = pnand %p1421_p8, %p926_p7  ;;  %p933_p13 = por %p932_p12, %p931_p11 }
  0x1d   : > { %p929_p10 = pneg %p928_p9 }
  0x1f   : > { %p934_p1 = pnand %p933_p13, %p929_p10 }
  0x21   : > { %937 = shalt.err (!%p934_p1)
}
  0x22   : > { %s938_s29 = scalar_lea.vmem %s248_s13, 128  ;;  %s1107_s8 = smov [#allocation5]  }
  0x23   : > { %p939_p2 = scmp.ne.s32.totalorder %s248_s13, %s938_s29  ;;  %s943_s10 = sshll.u32 %s1107_s8, 4  ;;  %s944_s10 = int_to_ptr.vmem [resolvable:$false] %s943_s10 }
  0x24   : > { %s945_s12 = scalar_lea.vmem %s944_s10, 256  ;;  %p946_p7 = scmp.lt.s32.totalorder %s248_s13, %s944_s10 }
  0x25   : > { %p941_p4 = pnand %p939_p2, %p1421_p8  ;;  %p947_p9 = scmp.lt.s32.totalorder %s945_s12, %s938_s29 }
  0x27   : > { %p942_p5 = pneg %p941_p4  ;;  %p948_p3 = por %p947_p9, %p946_p7 }
  0x29   : > { %p949_p0 = pnand %p948_p3, %p942_p5 }
  0x2b   : > { %952 = shalt.err (!%p949_p0)
}
  0x2c   : > { %857 = dma.hbm_to_vmem [thread:$0]  (!%p1202_p6), %s1199_s11, 128, %s248_s13, %s1211_s18  }
  0x2d   : > { %s1235_s15 = sadd.s32 4294967295, %s1105_s24   ;;  %s730_s16 = sadd.s32 4294967294, %s1105_s24  }
  0x2e   : > { %p65_p0 = scmp.ne.s32.totalorder %s1097_s22, %s1093_s21  ;;  %p1420_p3 = scmp.eq.s32.totalorder %s1235_s15, 0 }
  0x2f   : > { %p178_p10 = scmp.eq.s32.totalorder %s1235_s15, 1  ;;  %p184_p11 = scmp.eq.s32.totalorder %s730_s16, 1 }
  0x30   : > { %p1244_p12 = por %p1420_p3, %p65_p0  ;;  %p731_p13 = scmp.ge.s32.totalorder %s1105_s24, 1 }
  0x31   : > { %p1430_p1 = scmp.ne.s32.totalorder %s1101_s23, %s1097_s22  ;;  %p1256_p4 = por %p184_p11, %p65_p0 }
  0x32   : > { %s1429_s19 = scalar_select %p1244_p12, 1, 0 }
  0x33   : > { %p1252_p2 = por %p178_p10, %p1430_p1  ;;  %p191_p5 = scmp.lt.s32.totalorder %s1105_s24, 3 }
  0x34   : > { %s1432_s13 = scalar_select %p1256_p4, 1, 0 }
  0x35   : > { %s1431_s11 = scalar_select %p1252_p2, 1, 0 }
  0x36   : > { %p1261_p7 = pnand %p731_p13, %p191_p5  ;;  %s1108_s26 = smov [#allocation2]  }
  0x37   : > { %s203_s27 = sshll.u32 %s1108_s26, 4  ;;  %s1109_s30 = smov [#allocation8]   ;;  %s204_s27 = int_to_ptr.vmem [resolvable:$true] %s203_s27 }
  0x38   : > { %p847_p9 = pneg %p1261_p7  ;;  %s216_s9 = sshll.u32 %s1109_s30, 4  ;;  %s1273_s9 = int_to_ptr.vmem [resolvable:$true] %s216_s9 }
  0x39   : > { %s258_s8 = scalar_lea.vmem [#allocation7], %s1193_s7  ;;  %s964_s12 = scalar_lea.vmem %s204_s27, 256 }
  0x3a   : > { %p1269_p10 = pnand %p847_p9, %p1420_p3  ;;  %s265_s10 = sshll.u32 %s258_s8, 4  ;;  %s1276_s10 = int_to_ptr.vmem [resolvable:$true] %s265_s10 }
  0x3b   : > { %p965_p11 = scmp.ne.s32.totalorder %s204_s27, %s964_s12  ;;  %p972_p5 = scmp.lt.s32.totalorder %s204_s27, %s204_s27 }
  0x3c   : > { %p955_p0 = pneg %p1269_p10  ;;  %p973_p9 = scmp.lt.s32.totalorder %s964_s12, %s964_s12 }
  0x3e   : > { %p967_p13 = pnand %p965_p11, %p955_p0  ;;  %p974_p3 = por %p973_p9, %p972_p5 }
  0x40   : > { %p968_p1 = pneg %p967_p13 }
  0x42   : > { %p975_p8 = pnand %p974_p3, %p968_p1 }
  0x44   : > { %978 = shalt.err (!%p975_p8)
}
  0x45   : > { %s1110_s16 = smov 128   ;;  %s1111_s7 = smov 8  }
  0x46   : > { %s1435_s0 = sld [smem:[#allocation16_spill]]  ;;  %s990_s8 = scalar_lea.vmem %s1273_s9, 1024 }
  0x47   : > { %p991_p11 = scmp.ne.s32.totalorder %s1273_s9, %s990_s8  ;;  %p998_p8 = scmp.lt.s32.totalorder %s1273_s9, %s1273_s9 }
  0x48   : > { %p999_p3 = scmp.lt.s32.totalorder %s990_s8, %s990_s8 }
  0x49   : > { %p993_p13 = pnand %p991_p11, %p955_p0 }
  0x4a   : > { %p1000_p1 = por %p999_p3, %p998_p8 }
  0x4b   : > { %p994_p5 = pneg %p993_p13 }
  0x4c   : > { %850 = dma.hbm_to_vmem [thread:$0]  (!%p1269_p10), %s1435_s0, 256, %s204_s27, [#allocation3], %s1110_s16, %s1110_s16, %s1111_s7  }
  0x4d   : > { %p1001_p9 = pnand %p1000_p1, %p994_p5 }
  0x4f   : > { %1004 = shalt.err (!%p1001_p9)
}
  0x50   : > { %s1112_s12 = smov 64   ;;  %s1113_s27 = smov 4  }
  0x51   : > { %853 = dma.hbm_to_vmem [thread:$0]  (!%p1269_p10), %s1415_s3, 1024, %s1273_s9, [#allocation9], %s1112_s12, %s1112_s12, %s1113_s27  }
  0x52   : > { %s1005_s26 = scalar_lea.hbm %s1209_s17, 128  ;;  %p1436_p11 = pneg %p1202_p6 }
  0x53   : > { %p1006_p0 = scmp.ne.s32.totalorder %s1209_s17, %s1005_s26  ;;  %s1010_s0 = scalar_lea.hbm %s1414_s2, 256 }
  0x54   : > { %p1011_p8 = scmp.lt.s32.totalorder %s1209_s17, %s1414_s2  ;;  %p1012_p3 = scmp.lt.s32.totalorder %s1010_s0, %s1005_s26 }
  0x55   : > { %p1008_p13 = pnand %p1006_p0, %p1436_p11 }
  0x56   : > { %p1013_p1 = por %p1012_p3, %p1011_p8 }
  0x57   : > { %p1009_p5 = pneg %p1008_p13 }
  0x59   : > { %p1014_p9 = pnand %p1013_p1, %p1009_p5 }
  0x5b   : > { %1017 = shalt.err (!%p1014_p9)
}
  0x5c   : > { %s1018_s9 = scalar_lea.vmem %s1276_s10, 128  ;;  %p1437_p0 = pmov %p1436_p11 }
  0x5d   : > { %p1019_p10 = scmp.ne.s32.totalorder %s1276_s10, %s1018_s9  ;;  %s1114_s29 = smov [#allocation7]  }
  0x5e   : > { %s1023_s12 = sshll.u32 %s1114_s29, 4  ;;  %s1024_s12 = int_to_ptr.vmem [resolvable:$false] %s1023_s12 }
  0x5f   : > { %p1021_p11 = pnand %p1019_p10, %p1437_p0  ;;  %s1025_s27 = scalar_lea.vmem %s1024_s12, 256 }
  0x60   : > { %p1026_p4 = scmp.lt.s32.totalorder %s1276_s10, %s1024_s12  ;;  %p1027_p2 = scmp.lt.s32.totalorder %s1025_s27, %s1018_s9 }
  0x61   : > { %p1022_p13 = pneg %p1021_p11 }
  0x62   : > { %p1028_p12 = por %p1027_p2, %p1026_p4 }
  0x64   : > { %p1029_p8 = pnand %p1028_p12, %p1022_p13 }
  0x66   : > { %1032 = shalt.err (!%p1029_p8)
}
  0x67   : > { %860 = dma.hbm_to_vmem [thread:$0]  (!%p1202_p6), %s1209_s17, 128, %s1276_s10, %s1211_s18  }
  0x68   : > { %274 = sbr.rel (%p1261_p7) target bundleno = 1001 (0x3e9), region = 44  ;;  %p1438_p5 = scmp.eq.s32.totalorder (!%p1261_p7), %s1235_s15, 0 }
  0x6d   : > { %1076 = dma.done.wait (%p1438_p5), [#allocation3], 256   ;;  %p1439_p3 = pmov %p1438_p5 }
  0x6e   : > { %s280_s0 = sand.u32 1, %s1235_s15   ;;  %s282_s1 = sand.u32 1, %s1097_s22  }
  0x6f   : > { %1078 = vsyncadd (%p1439_p3), [#allocation3], 4294967040  ;;  %s1334_s28 = sshll.u32 %s282_s1, 3  ;;  %s281_s14 = scalar_lea.sflag [#allocation6], %s280_s0 }
  0x70   : > { %s284_s17 = scalar_lea.vmem [#allocation5], %s1334_s28  ;;  %p1440_p6 = scmp.ne.s32.totalorder %s1429_s19, 0 }
  0x72   : > { %1080 = dma.done.wait (%p1440_p6), %s281_s14, 256  }
  0x73   : > { %1082 = vsyncadd (%p1440_p6), %s281_s14, 4294967040  ;;  %s293_s18 = scalar_lea.vmem [#allocation7], %s1334_s28  ;;  %p1441_p12 = pmov %p1439_p3 }
  0x74   : > { %p1442_p2 = pmov %p1439_p3 }
  0x75   : > { %1084 = dma.done.wait (%p1441_p12), [#allocation9], 1024  }
  0x76   : > { %1086 = vsyncadd (%p1442_p2), [#allocation9], 4294966272  ;;  %v1115_v0 = vmov 0.0   ;;  %vm1116_vm0 = vmmov 0   ;;  %v1117_v1 = vmov 16   ;;  %v913_v2 = vld [vmem:[#allocation8 + $0x38] sm:$0xff]   ;;  %v528_v29 = vlaneseq }
  0x77   : > { %801 = vmatprep.subr.bf16.mxu1 %v1115_v0  ;;  %817 = vmatprep.mubr.msk.bf16.mxu1 %vm1116_vm0, %v1115_v0  ;;  %v914_v3 = vld [vmem:[#allocation8 + $0x30] sm:$0xff]   ;;  %v915_v4 = vld [vmem:[#allocation8 + $0x28] sm:$0xff]   ;;  %v916_v5 = vld [vmem:[#allocation8 + $0x20] sm:$0xff]   ;;  %vm538_vm2 = vcmask 130048   ;;  %s756_s7 = sshll.u32 %s1235_s15, 7  ;;  %s330_s26 = scalar_lea.vmem [#allocation10], %s1334_s28 }
  0x78   : > { %781 = vmatprep.subr.bf16.mxu0 %v1115_v0  ;;  %797 = vmatprep.mubr.msk.bf16.mxu0 %vm1116_vm0, %v1115_v0  ;;  %v917_v6 = vld [vmem:[#allocation8 + $0x18] sm:$0xff]   ;;  %v918_v7 = vld [vmem:[#allocation8 + $0x10] sm:$0xff]   ;;  %v919_v8 = vld [vmem:[#allocation8 + $0x8] sm:$0xff]   ;;  %v529_v30 = vshrl.u32 %v528_v29, 7  ;;  %s618_s30 = sshll.u32 %s330_s26, 4  ;;  %s1368_s29 = scalar_lea.hbm %s1418_s6, %s756_s7  ;;  %s1370_s30 = int_to_ptr.vmem [resolvable:$true] %s618_s30 }
  0x79   : > { %912 = vset.pattern.permute.xlu0 %v1117_v1  ;;  %802 = vmatpush3.bf16.msra.mxu1 %v913_v2  ;;  %v920_v9 = vld [vmem:[#allocation8] sm:$0xff]   ;;  %v332_v11 = vld [vmem:[#allocation2] sm:$0xff]  ;;  %v333_v12 = vld [vmem:[#allocation2 + $0x8] sm:$0xff]  ;;  %s605_s15 = scalar_lea.sflag [#allocation4], %s282_s1  ;;  %s1033_s12 = scalar_lea.vmem %s1370_s30, 128 }
  0x7a   : > { %782 = vmatpush3.bf16.msra.mxu0 %v913_v2  ;;  %803 = vmatprep.subr.bf16.mxu1 %v1115_v0  ;;  %v335_v10 = vld [vmem:[%s284_s17] sm:$0xff]  ;;  %v334_v14 = vpack.c.bf16 %v333_v12, %v332_v11  ;;  %v482_v15 = vld [vmem:[%s1416_s4] sm:$0x1]  ;;  %v530_v31 = vsub.s32 0, %v529_v30  ;;  %p1034_p4 = scmp.ne.s32.totalorder %s1370_s30, %s1033_s12  ;;  %p1443_p7 = scmp.ne.s32.totalorder %s1431_s11, 0 }
  0x7b   : > { %783 = vmatprep.subr.bf16.mxu0 %v1115_v0  ;;  %v336_v13 = vpack.c.bf16 %v335_v10, %v335_v10  ;;  %v535_v35 = vld [vmem:[%s293_s18] sm:$0xff]  ;;  %s1118_s27 = smov [#allocation10]  }
  0x7c   : > { %vm536_vm1 = vcmp.gt.f32.partialorder %v535_v35, 0.0  ;;  %v753_v49 = vld [vmem:[%s1417_s5] ss:$0 sm:$0xff]  ;;  %p1035_p1 = pnand %p1034_p4, %p1443_p7  ;;  %s1037_s0 = sshll.u32 %s1118_s27, 4  ;;  %s1038_s0 = int_to_ptr.vmem [resolvable:$false] %s1037_s0 }
  0x7d   : > { %804 = vmatpush3.bf16.msra.mxu1 %v914_v3  ;;  %s1039_s28 = scalar_lea.vmem %s1038_s0, 256  ;;  %p1040_p10 = scmp.lt.s32.totalorder %s1370_s30, %s1038_s0 }
  0x7e   : > { %784 = vmatpush3.bf16.msra.mxu0 %v914_v3  ;;  %805 = vmatprep.subr.bf16.mxu1 %v1115_v0  ;;  %p1036_p9 = pneg %p1035_p1  ;;  %p1041_p0 = scmp.lt.s32.totalorder %s1039_s28, %s1033_s12 }
  0x7f   : > { %785 = vmatprep.subr.bf16.mxu0 %v1115_v0 }
  0x80   : > { %p1042_p11 = por %p1041_p0, %p1040_p10 }
  0x81   : > { %806 = vmatpush3.bf16.msra.mxu1 %v915_v4 }
  0x82   : > { %786 = vmatpush3.bf16.msra.mxu0 %v915_v4  ;;  %807 = vmatprep.subr.bf16.mxu1 %v1115_v0  ;;  %p1043_p13 = pnand %p1042_p11, %p1036_p9 }
  0x83   : > { %787 = vmatprep.subr.bf16.mxu0 %v1115_v0 }
  0x85   : > { %808 = vmatpush3.bf16.msra.mxu1 %v916_v5 }
  0x86   : > { %788 = vmatpush3.bf16.msra.mxu0 %v916_v5  ;;  %809 = vmatprep.subr.bf16.mxu1 %v1115_v0 }
  0x87   : > { %789 = vmatprep.subr.bf16.mxu0 %v1115_v0 }
  0x89   : > { %810 = vmatpush3.bf16.msra.mxu1 %v917_v6 }
  0x8a   : > { %790 = vmatpush3.bf16.msra.mxu0 %v917_v6  ;;  %811 = vmatprep.subr.bf16.mxu1 %v1115_v0 }
  0x8b   : > { %791 = vmatprep.subr.bf16.mxu0 %v1115_v0 }
  0x8d   : > { %812 = vmatpush3.bf16.msra.mxu1 %v918_v7 }
  0x8e   : > { %792 = vmatpush3.bf16.msra.mxu0 %v918_v7  ;;  %813 = vmatprep.subr.bf16.mxu1 %v1115_v0 }
  0x8f   : > { %793 = vmatprep.subr.bf16.mxu0 %v1115_v0 }
  0x91   : > { %814 = vmatpush3.bf16.msra.mxu1 %v919_v8 }
  0x92   : > { %794 = vmatpush3.bf16.msra.mxu0 %v919_v8  ;;  %815 = vmatprep.subr.bf16.mxu1 %v1115_v0 }
  0x93   : > { %795 = vmatprep.subr.bf16.mxu0 %v1115_v0 }
  0x95   : > { %816 = vmatpush3.bf16.msra.mxu1 %v920_v9 }
  0x96   : > { %796 = vmatpush3.bf16.msra.mxu0 %v920_v9  ;;  %827 = vmatprep.subr.bf16.mxu1 %v1115_v0 }
  0x97   : > { %821 = vmatprep.subr.bf16.mxu0 %v1115_v0 }
  0x98   : > { %818 = vmatmul.mubr.bf16.vlgmr.msra.gmra.mxu1 %v336_v13 }
  0x99   : > { %798 = vmatmul.mubr.bf16.vlgmr.msra.gmra.mxu0 %v334_v14  ;;  %829 = vmatprep.mubr.msk.bf16.mxu1 %vm1116_vm0, %v1115_v0 }
  0x9a   : > { %822 = vmatpush3.bf16.xpose.msra.mxu0 %v334_v14  ;;  %823 = vmatprep.mubr.msk.bf16.mxu0 %vm1116_vm0, %v1115_v0 }
  0xa1   : > { %824 = vmatmul.mubr.bf16.vlgmr.msra.gmra.mxu0 %v482_v15 }
 0x158   : > { %v476_v16 = vpop.f32.mrf.mxu1 }
 0x159   : > { %v435_v17 = vpop.f32.mrf.mxu0  ;;  %525 = vperm.xlu0 %912, %v476_v16  }
 0x15a   : > { %v819_v18 = vpop.f32.mrf.mxu1 }
 0x15b   : > { %v799_v19 = vpop.f32.mrf.mxu0 }
 0x15c   : > { %v479_v20 = vpop.f32.mrf.mxu1 }
 0x15d   : > { %v438_v21 = vpop.f32.mrf.mxu0 }
 0x15e   : > { %v551_v22 = vpack.c.bf16 %v438_v21, %v435_v17  ;;  %v820_v23 = vpop.f32.mrf.mxu1 }
 0x15f   : > { %v800_v24 = vpop.f32.mrf.mxu0 }
 0x160   : > { %828 = vmatpush3.bf16.msra.mxu1 %v551_v22 }
 0x161   : > { %v517_v25 = vpop.f32.mrf.mxu0 }
 0x162   : > { %v531_v32 = vrot.slane %v517_v25, %v530_v31 }
 0x163   : > { %v825_v26 = vpop.f32.mrf.mxu0 }
 0x165   : > { %v520_v27 = vpop.f32.mrf.mxu0 }
 0x167   : > { %v826_v28 = vpop.f32.mrf.mxu0 }
 0x1d4   : > { %v526_v33 = vpop.permute.xlu0 %525 }
 0x1d5   : > { %v532_v34 = vadd.f32 %v531_v32, %v526_v33 }
 0x1d7   : > { %v533_v36 = vmul.f32 0.2, %v532_v34 }
 0x1d9   : > { %v534_v37 = vmax.f32 %v532_v34, %v533_v36 }
 0x1db   : > { %v537_v38 = vsel %vm536_vm1, %v534_v37, -1e+30 }
 0x1dc   : > { %v539_v39 = vsel %vm538_vm2, %v537_v38, -inf }
 0x1dd   : > { %540 = vmax.xlane.f32.xlu0 %v539_v39 }
 0x266   : > { %v541_v40 = vpop.xlane.xlu0 %540 }
 0x267   : > { %v542_v41 = vsub.f32 %v537_v38, %v541_v40 }
 0x269   : > { %v543_v42 = vmul.f32 1.442695, %v542_v41 }
 0x26b   : > { %921 = vpow2.f32 %v543_v42 }
 0x278   : > { %v922_v43 = vpop.eup %921 }
 0x279   : > { %v545_v44 = vsel %vm538_vm2, %v922_v43, 0.0 }
 0x27a   : > { %546 = vadd.xlane.f32.xlu1 %v545_v44 }
 0x303   : > { %v547_v45 = vpop.xlane.xlu1 %546 }
 0x304   : > { %923 = vrcp.f32 %v547_v45 }
 0x311   : > { %v924_v46 = vpop.eup %923 }
 0x312   : > { %v549_v47 = vmul.f32 %v924_v46, %v922_v43 }
 0x314   : > { %v550_v48 = vpack.c.bf16 %v549_v47, %v549_v47 }
 0x316   : > { %830 = vmatmul.mubr.msk.bf16.vlgmr.msra.gmra.mxu1 %vm538_vm2, %v550_v48 }
 0x3d6   : > { %v596_v50 = vpop.f32.mrf.mxu1 }
 0x3d7   : > { %v597_v51 = vadd.f32 %v753_v49, %v596_v50 }
 0x3d8   : > { %v831_v52 = vpop.f32.mrf.mxu1 }
 0x3d9   : > { %v602_v53 = vmax.f32 %v597_v51, 0.0 }
 0x3da   : > { %v599_v54 = vpop.f32.mrf.mxu1 }
 0x3db   : > { %603 = vst [vmem:[%s330_s26] sm:$0xff] %v602_v53 }
 0x3dc   : > { %v832_v55 = vpop.f32.mrf.mxu1 }
 0x3dd   : > { %1046 = shalt.err (!%p1043_p13)
}
 0x3de   : > { %s1047_s14 = scalar_lea.hbm %s1368_s29, 128  ;;  %s1051_s18 = scalar_lea.hbm %s1418_s6, 256 }
 0x3df   : > { %p1048_p8 = scmp.ne.s32.totalorder %s1368_s29, %s1047_s14  ;;  %p1052_p6 = scmp.lt.s32.totalorder %s1368_s29, %s1418_s6 }
 0x3e0   : > { %p1053_p12 = scmp.lt.s32.totalorder %s1051_s18, %s1047_s14 }
 0x3e1   : > { %p1049_p5 = pnand %p1048_p8, %p1443_p7 }
 0x3e2   : > { %p1054_p2 = por %p1053_p12, %p1052_p6 }
 0x3e3   : > { %p1050_p3 = pneg %p1049_p5 }
 0x3e5   : > { %p1055_p4 = pnand %p1054_p2, %p1050_p3 }
 0x3e7   : > { %1058 = shalt.err (!%p1055_p4)
}
 0x3e8   : > { %845 = dma.vmem_to_hbm [thread:$0]  (%p1443_p7), %s1370_s30, 128, %s1368_s29, %s605_s15  }
 0x3e9 PF: > { %s630_s10 = sand.u32 1, %s1093_s21   ;;  %p1444_p1 = scmp.ne.s32.totalorder %s1432_s13, 0 }
 0x3ea   : > { %p1445_p9 = scmp.ge.s32.totalorder %s1105_s24, 2  ;;  %s631_s16 = scalar_lea.sflag [#allocation4], %s630_s10 }
 0x3ec   : > { %p862_p10 = pnand %p1445_p9, %p1444_p1 }
 0x3ee   : > { %p863_p0 = pneg %p862_p10 }
 0x3f0   : > { %1088 = dma.done.wait (%p863_p0), %s631_s16, 128  }
 0x3f1   : > { %1090 = vsyncadd (%p863_p0), %s631_s16, 4294967168  ;;  %s1446_s7 = sld [smem:[#allocation15_spill]]  ;;  %p21_p11 = scmp.ge.s32.totalorder %s1175_s25, 4  }
 0x3f2   : > { %s1447_s21 = smov %s1097_s22  ;;  %s1448_s22 = smov %s1101_s23 }
 0x3f3   : > { %s1450_s24 = smov %s1175_s25  ;;  %23 = sbr.rel (!%p21_p11) target bundleno = 10 (0xa), region = 109 }
 0x3f7   : > { %s1449_s23 = smov %s1446_s7 }
 0x3f8   :  { %636 = vsyncpa [#allocation3], 1 }
 0x3f9   :  { %638 = vsyncpa [#allocation3 + $0x1], 1 }
 0x3fa   :  { %639 = vsyncpa [#allocation6], 1 }
 0x3fb   :  { %641 = vsyncpa [#allocation6 + $0x1], 1 }
 0x3fc   :  { %642 = vsyncpa [#allocation9], 1 }
 0x3fd   :  { %643 = vsyncpa [#allocation4], 1 }
 0x3fe   :  { %645 = vsyncpa [#allocation4 + $0x1], 1 }

</bundles_post_ra>
